<compile_context>
chip_gen: v6e
topology: v6e:2x2x1
jax: 0.10.0
libtpu: 0.0.40
codegen_flags: <defaults>
</compile_context>

<pallas_src>
import functools
import math

import jax
import jax.numpy as jnp
from jax import lax
from jax.experimental import pallas as pl
from jax.experimental.pallas import tpu as pltpu


def _round_up(x, m):
  return ((x + m - 1) // m) * m


# ---------------------------------------------------------------------------
# Kernel
# ---------------------------------------------------------------------------
def _attention_head_kernel(x_ref, z_ref, m_ref, wqk_ref, wv_ref, o_ref, *,
                           d_kp, rbf, mxu_dtype):
  """One batch tile per grid step.  All refs are VMEM blocks.

  x_ref  : (Bt, N, D)     activations (mxu_dtype)
  z_ref  : (Bt, N, Dz)    covariance stream, UNPADDED (mxu_dtype)
  m_ref  : (Bt, N, N)     0/1 mask (mxu_dtype; 0/1 is exact in bf16)
  wqk_ref: (D, 2*d_kp)    [Wq_eff^T | Wk_eff^T], 128-lane-aligned groups
  wv_ref : (Dz, Dzp)      Wv^T, zero-padded on OUTPUT columns only
  o_ref  : (Bt, N, Dzp)   lane-dense output block
  """
  Bt, N, D = x_ref.shape

  # Fused Q/K projection over the whole (Bt*N, D) slab: one wide MXU push.
  x_flat = x_ref[...].reshape(Bt * N, D)
  qk = jnp.dot(x_flat, wqk_ref[...],
               preferred_element_type=jnp.float32)              # (Bt*N, 2*d_kp)
  qk = qk.reshape(Bt, N, 2 * d_kp)
  # Lane-tile-aligned (free) slices; columns >= d_k are exact zeros, so they
  # contribute nothing to scores / q_sq / k_sq.
  q = qk[:, :, :d_kp]                                           # (Bt, N, d_kp)
  k = qk[:, :, d_kp:]                                           # (Bt, N, d_kp)

  # Pairwise scores: batched dot_general contracting last dims (no explicit
  # transpose of k — MXU consumes it natively).
  scores = lax.dot_general(q.astype(mxu_dtype), k.astype(mxu_dtype),
                           (((2,), (2,)), ((0,), (0,))),
                           preferred_element_type=jnp.float32)  # (Bt, N, N)

  if rbf:
    # h_tilde(q, k) = exp(-||q - k||^2 / d_k).  The 1/sqrt(d_k) scale is
    # pre-folded into BOTH Wq and Wk, so the exponent is just -d2 here (one
    # fewer (Bt,N,N) f32 VPU multiply).  Kept in f32; clamp fp dust at 0.
    q_sq = jnp.sum(q * q, axis=-1, keepdims=True)               # (Bt, N, 1)
    k_sq = jnp.sum(k * k, axis=-1)[:, None, :]                  # (Bt, 1, N)
    d2 = jnp.maximum(q_sq + k_sq - 2.0 * scores, 0.0)
    scores = jnp.exp(-d2)                                       # EUP
  # else: scaled dot product — 1/sqrt(d_k) pre-folded into Wq.

  # Mask multiply in f32 (v5e has no bf16 VPU); mask values 0/1 are exact.
  masked = scores * m_ref[...].astype(jnp.float32)              # (Bt, N, N)

  # T = masked @ Z  (batched, K = N), then update = T @ Wv^T (shared weight;
  # Wv^T output columns padded to Dzp -> lane-dense stores on o_ref).
  term = lax.dot_general(masked.astype(mxu_dtype), z_ref[...],
                         (((2,), (1,)), ((0,), (0,))),
                         preferred_element_type=jnp.float32)    # (Bt, N, Dz)
  update = lax.dot_general(term.astype(mxu_dtype), wv_ref[...],
                           (((2,), (0,)), ((), ())),
                           preferred_element_type=jnp.float32)  # (Bt, N, Dzp)

  o_ref[...] = update.astype(o_ref.dtype)


# ---------------------------------------------------------------------------
# Generation-aware parameters & tiling
# ---------------------------------------------------------------------------
def _tpu_generation_params():
  """Returns (vmem_limit_bytes, num_tensorcores) tuned per TPU generation."""
  vmem_cap = None
  try:
    info = pltpu.get_tpu_info()
    vmem_cap = getattr(info, "vmem_capacity_bytes", None)
  except Exception:
    vmem_cap = None
  kind = ""
  try:
    kind = jax.devices()[0].device_kind.lower()
  except Exception:
    pass
  num_cores = 2 if "v7" in kind else 1
  if vmem_cap is None:
    vmem_cap = (64 if "v7" in kind else 128) * 1024 * 1024
  if vmem_cap <= 64 * 1024 * 1024:
    # v7x: only 64 MiB physical VMEM per TC -> leave headroom for scratch.
    vmem_limit = 40 * 1024 * 1024
  else:
    # v5e / v6e: 128 MiB physical VMEM.
    vmem_limit = 96 * 1024 * 1024
  return vmem_limit, num_cores


def _pick_batch_tile(B, N, per_elem_block_bytes, vmem_limit, num_cores,
                     min_rows=512):
  """VMEM-budget-driven batch tile.

  Keeps double-buffered data blocks within ~half the scoped-VMEM limit (rest
  is headroom for weights, intermediates and compiler scratch), guarantees at
  least one grid step per TensorCore (so the "parallel" batch axis can shard
  across v7x's 2 TCs), and prefers the smallest tile giving >= min_rows
  projection rows per step to amortize the ~0.35 us/step pipeline overhead.
  """
  block_budget = vmem_limit // 2
  divisors = [bt for bt in range(1, B + 1) if B % bt == 0]
  feasible = []
  for bt in divisors:
    if 2 * bt * per_elem_block_bytes > block_budget:   # x2: double buffering
      continue
    if (B // bt) < min(num_cores, B):                  # >=1 step per TC
      continue
    feasible.append(bt)
  if not feasible:
    return 1
  for bt in feasible:
    if bt * N >= min_rows:
      return bt
  return feasible[-1]


# ---------------------------------------------------------------------------
# Weight prep (hoist this out of the per-call hot path in real pipelines)
# ---------------------------------------------------------------------------
def prepare_attention_head_weights(Wq, Wk, Wv, *, h_tilde="dot",
                                   mxu_dtype=jnp.bfloat16):
  """Wq, Wk: (d_k, D); Wv: (Dz, Dz) — PyTorch Linear (out, in) layout."""
  assert h_tilde in ("dot", "rbf")
  d_k, D = Wq.shape
  Dz = Wv.shape[0]
  assert Wk.shape == (d_k, D) and Wv.shape == (Dz, Dz)

  d_kp = _round_up(d_k, 128)
  Dzp = _round_up(Dz, 128)

  inv_sqrt_dk = 1.0 / math.sqrt(d_k)
  if h_tilde == "dot":
    wq_eff, wk_eff = Wq * inv_sqrt_dk, Wk
  else:  # rbf: ||q-k||^2/d_k == ||q/sqrt(d_k) - k/sqrt(d_k)||^2
    wq_eff, wk_eff = Wq * inv_sqrt_dk, Wk * inv_sqrt_dk

  # Fused, pre-transposed, 128-lane-aligned projection weight (D, 2*d_kp):
  # columns [0:d_kp) hold Wq_eff^T, [d_kp:2*d_kp) hold Wk_eff^T, rest zero.
  w_qk = jnp.zeros((D, 2 * d_kp), jnp.float32)
  w_qk = w_qk.at[:, :d_k].set(wq_eff.T)
  w_qk = w_qk.at[:, d_kp:d_kp + d_k].set(wk_eff.T)

  # Wv^T with OUTPUT columns zero-padded to Dzp (lane-dense output stores);
  # contraction stays Dz so Z_l never needs padding.
  wv_t = jnp.zeros((Dz, Dzp), jnp.float32).at[:, :Dz].set(Wv.T)

  return (w_qk.astype(mxu_dtype), wv_t.astype(mxu_dtype),
          d_k, d_kp, Dz, Dzp, h_tilde == "rbf", mxu_dtype)


# ---------------------------------------------------------------------------
# Wrappers
# ---------------------------------------------------------------------------
def attention_head_pallas_prepped(params, Z_l, X_l, M_mask, *,
                                  batch_tile=None, return_padded=False):
  (w_qk, wv_t, d_k, d_kp, Dz, Dzp, rbf, mxu_dtype) = params
  B, N, D = X_l.shape
  assert Z_l.shape == (B, N, Dz) and M_mask.shape == (B, N, N)

  out_dtype = Z_l.dtype
  # Ship the big streams narrow (halved HBM->VMEM DMA; mask 0/1 exact in bf16).
  # TODO(synk): in a real pipeline store X_l/Z_l/M_mask in the narrow dtype
  # upstream instead of casting per call (these casts are extra HBM passes).
  if X_l.dtype != mxu_dtype:
    X_l = X_l.astype(mxu_dtype)
  if Z_l.dtype != mxu_dtype:
    Z_l = Z_l.astype(mxu_dtype)
  if M_mask.dtype != mxu_dtype:
    M_mask = M_mask.astype(mxu_dtype)

  vmem_limit, num_cores = _tpu_generation_params()
  in_b = jnp.dtype(mxu_dtype).itemsize
  out_b = jnp.dtype(out_dtype).itemsize
  per_elem = N * (D * in_b + Dz * in_b + N * in_b + Dzp * out_b)
  Bt = batch_tile if batch_tile is not None else _pick_batch_tile(
      B, N, per_elem, vmem_limit, num_cores)
  assert B % Bt == 0, "batch must be divisible by the batch tile"

  kernel = functools.partial(_attention_head_kernel, d_kp=d_kp, rbf=rbf,
                             mxu_dtype=mxu_dtype)

  out_pad = pl.pallas_call(
      kernel,
      out_shape=jax.ShapeDtypeStruct((B, N, Dzp), out_dtype),
      grid=(B // Bt,),
      in_specs=[
          pl.BlockSpec((Bt, N, D), lambda b: (b, 0, 0)),        # X_l
          pl.BlockSpec((Bt, N, Dz), lambda b: (b, 0, 0)),       # Z_l (unpadded)
          pl.BlockSpec((Bt, N, N), lambda b: (b, 0, 0)),        # M_mask
          pl.BlockSpec((D, 2 * d_kp), lambda b: (0, 0)),        # [Wq|Wk]^T
          pl.BlockSpec((Dz, Dzp), lambda b: (0, 0)),            # Wv^T (col-pad)
      ],
      out_specs=pl.BlockSpec((Bt, N, Dzp), lambda b: (b, 0, 0)),
      compiler_params=pltpu.CompilerParams(
          dimension_semantics=("parallel",),
          vmem_limit_bytes=vmem_limit),
  )(X_l, Z_l, M_mask, w_qk, wv_t)

  if return_padded:
    return out_pad   # consumer uses the first Dz columns; avoids a slice pass
  # TODO(synk): this slice is an extra HBM read+write pass over the output;
  # prefer return_padded=True when the consumer can take a (B, N, Dzp) buffer.
  return out_pad[..., :Dz]


def attention_head_pallas(Z_l, X_l, M_mask, Wq, Wk, Wv, *, h_tilde="dot",
                          mxu_dtype=jnp.bfloat16, batch_tile=None,
                          return_padded=False):
  params = prepare_attention_head_weights(Wq, Wk, Wv, h_tilde=h_tilde,
                                          mxu_dtype=mxu_dtype)
  return attention_head_pallas_prepped(params, Z_l, X_l, M_mask,
                                       batch_tile=batch_tile,
                                       return_padded=return_padded)


def attention_head_ref(Z_l, X_l, M_mask, Wq, Wk, Wv, *, h_tilde="dot"):
  """Pure-JAX reference mirroring the PyTorch AttentionHead.forward exactly."""
  d_k = Wq.shape[0]
  q = jnp.einsum('bnd,kd->bnk', X_l, Wq)
  k = jnp.einsum('bnd,kd->bnk', X_l, Wk)
  qk = jnp.einsum('bik,bjk->bij', q, k)
  if h_tilde == "dot":
    scores = qk / math.sqrt(d_k)
  else:
    d2 = (jnp.sum(q * q, -1)[:, :, None]
          + jnp.sum(k * k, -1)[:, None, :] - 2.0 * qk)
    scores = jnp.exp(-d2 / d_k)
  term = jnp.einsum('bij,bjc->bic', scores * M_mask, Z_l)
  return jnp.einsum('bic,oc->bio', term, Wv)


if __name__ == "__main__":
  # Small shapes consistent with the module.
  B, N = 2, 16
  d_model_cov = 32
  d_k = 16
  Dz = d_model_cov + 1                  # 33

  key = jax.random.PRNGKey(0)
  kz, kx, km, kq, kk_, kv = jax.random.split(key, 6)

  Z_l = jax.random.normal(kz, (B, N, Dz), dtype=jnp.float32)
  X_l = jax.random.normal(kx, (B, N, d_model_cov), dtype=jnp.float32)
  M_mask = (jax.random.uniform(km, (B, N, N)) > 0.5).astype(jnp.float32)

  # PyTorch Linear weight layout: (out_features, in_features).
  scale_qk = 1.0 / math.sqrt(d_model_cov)
  scale_v = 1.0 / math.sqrt(Dz)
  Wq = jax.random.normal(kq, (d_k, d_model_cov), jnp.float32) * scale_qk
  Wk = jax.random.normal(kk_, (d_k, d_model_cov), jnp.float32) * scale_qk
  Wv = jax.random.normal(kv, (Dz, Dz), jnp.float32) * scale_v

  for h_tilde in ("dot", "rbf"):
    ref = attention_head_ref(Z_l, X_l, M_mask, Wq, Wk, Wv, h_tilde=h_tilde)
    ref_scale = float(jnp.max(jnp.abs(ref))) + 1.0
    # f32 MXU path: bit-tight check.  bf16 MXU path (default): relaxed check.
    for mxu_dtype, tol in ((jnp.float32, 1e-4), (jnp.bfloat16, 8e-2)):
      out = attention_head_pallas(Z_l, X_l, M_mask, Wq, Wk, Wv,
                                  h_tilde=h_tilde, mxu_dtype=mxu_dtype)
      out = jax.block_until_ready(out)
      assert out.shape == (B, N, Dz)
      err = float(jnp.max(jnp.abs(out.astype(jnp.float32) - ref)))
      assert err <= tol * ref_scale, (
          f"{h_tilde}/{jnp.dtype(mxu_dtype).name}: max abs err {err} "
          f"(tol {tol * ref_scale})")

  print("KERNEL_OK")
</pallas_src>

<mosaic_0001>
module attributes {stable_mosaic.version = 11 : i64} {
  func.func @_attention_head_kernel(%arg0: i32, %arg1: memref<2x16x32xf32, #tpu.memory_space<vmem>>, %arg2: memref<2x16x33xf32, #tpu.memory_space<vmem>>, %arg3: memref<2x16x16xf32, #tpu.memory_space<vmem>>, %arg4: memref<32x256xf32, #tpu.memory_space<vmem>>, %arg5: memref<33x128xf32, #tpu.memory_space<vmem>>, %arg6: memref<2x16x128xf32, #tpu.memory_space<vmem>>) attributes {dimension_semantics = [#tpu.dimension_semantics<parallel>], iteration_bounds = array<i64: 1>, scalar_prefetch = 0 : i64, scratch_operands = 0 : i64, tpu.core_type = #tpu.core_type<tc>, window_params = [{transform_indices = @transform_0, window_bounds = array<i64: 2, 16, 32>}, {transform_indices = @transform_1, window_bounds = array<i64: 2, 16, 33>}, {transform_indices = @transform_2, window_bounds = array<i64: 2, 16, 16>}, {pipeline_mode = #tpu.pipeline_mode<synchronous>, transform_indices = @transform_3, window_bounds = array<i64: 32, 256>}, {pipeline_mode = #tpu.pipeline_mode<synchronous>, transform_indices = @transform_4, window_bounds = array<i64: 33, 128>}, {transform_indices = @transform_5, window_bounds = array<i64: 2, 16, 128>}]} {
    %c0 = arith.constant 0 : index
    %c0_0 = arith.constant 0 : index
    %c0_1 = arith.constant 0 : index
    %0 = vector.load %arg1[%c0, %c0_0, %c0_1] : memref<2x16x32xf32, #tpu.memory_space<vmem>>, vector<2x16x32xf32>
    %1 = vector.shape_cast %0 : vector<2x16x32xf32> to vector<32x32xf32>
    %c0_2 = arith.constant 0 : index
    %c0_3 = arith.constant 0 : index
    %2 = vector.load %arg4[%c0_2, %c0_3] : memref<32x256xf32, #tpu.memory_space<vmem>>, vector<32x256xf32>
    %cst = arith.constant dense<0.000000e+00> : vector<32x256xf32>
    %3 = tpu.matmul %1, %2, %cst {dimension_numbers = #tpu.dot_dimension_numbers<[1], [0], [0], [1], [0, 0, 1, 1], [], []>} : vector<32x32xf32>, vector<32x256xf32>, vector<32x256xf32> -> vector<32x256xf32>
    %4 = vector.shape_cast %3 : vector<32x256xf32> to vector<2x16x256xf32>
    %5 = vector.extract_strided_slice %4 {offsets = [0, 0, 0], sizes = [2, 16, 128], strides = [1, 1, 1]} : vector<2x16x256xf32> to vector<2x16x128xf32>
    %6 = vector.extract_strided_slice %4 {offsets = [0, 0, 128], sizes = [2, 16, 128], strides = [1, 1, 1]} : vector<2x16x256xf32> to vector<2x16x128xf32>
    %cst_4 = arith.constant dense<0.000000e+00> : vector<2x16x16xf32>
    %7 = tpu.matmul %5, %6, %cst_4 {dimension_numbers = #tpu.dot_dimension_numbers<[2], [2], [1], [1], [0, 0, 0, 1, 1, 1], [0], [0]>} : vector<2x16x128xf32>, vector<2x16x128xf32>, vector<2x16x16xf32> -> vector<2x16x16xf32>
    %c0_5 = arith.constant 0 : index
    %c0_6 = arith.constant 0 : index
    %c0_7 = arith.constant 0 : index
    %8 = vector.load %arg3[%c0_5, %c0_6, %c0_7] : memref<2x16x16xf32, #tpu.memory_space<vmem>>, vector<2x16x16xf32>
    %9 = arith.mulf %7, %8 : vector<2x16x16xf32>
    %c0_8 = arith.constant 0 : index
    %c0_9 = arith.constant 0 : index
    %c0_10 = arith.constant 0 : index
    %10 = vector.load %arg2[%c0_8, %c0_9, %c0_10] : memref<2x16x33xf32, #tpu.memory_space<vmem>>, vector<2x16x33xf32>
    %cst_11 = arith.constant dense<0.000000e+00> : vector<2x16x33xf32>
    %11 = tpu.matmul %9, %10, %cst_11 {dimension_numbers = #tpu.dot_dimension_numbers<[2], [1], [1], [2], [0, 0, 0, 1, 1, 2], [0], [0]>} : vector<2x16x16xf32>, vector<2x16x33xf32>, vector<2x16x33xf32> -> vector<2x16x33xf32>
    %c0_12 = arith.constant 0 : index
    %c0_13 = arith.constant 0 : index
    %12 = vector.load %arg5[%c0_12, %c0_13] : memref<33x128xf32, #tpu.memory_space<vmem>>, vector<33x128xf32>
    %cst_14 = arith.constant dense<0.000000e+00> : vector<2x16x128xf32>
    %13 = tpu.matmul %11, %12, %cst_14 {dimension_numbers = #tpu.dot_dimension_numbers<[2], [0], [0, 1], [1], [0, 0, 0, 1, 1, 1], [], []>} : vector<2x16x33xf32>, vector<33x128xf32>, vector<2x16x128xf32> -> vector<2x16x128xf32>
    %c0_15 = arith.constant 0 : index
    %c0_16 = arith.constant 0 : index
    %c0_17 = arith.constant 0 : index
    %14 = vector.load %arg6[%c0_15, %c0_16, %c0_17] : memref<2x16x128xf32, #tpu.memory_space<vmem>>, vector<2x16x128xf32>
    tpu.vector_store %arg6[%c0_15, %c0_16, %c0_17], %13 {strides = array<i32>} : memref<2x16x128xf32, #tpu.memory_space<vmem>>, vector<2x16x128xf32>,
    return
  }
  func.func @transform_0(%arg0: i32) -> (i32, i32, i32) {
    %c0_i32 = arith.constant 0 : i32
    %c0_i32_0 = arith.constant 0 : i32
    %c0_i32_1 = arith.constant 0 : i32
    return %arg0, %c0_i32, %c0_i32_0 : i32, i32, i32
  }
  func.func @transform_1(%arg0: i32) -> (i32, i32, i32) {
    %c0_i32 = arith.constant 0 : i32
    %c0_i32_0 = arith.constant 0 : i32
    %c0_i32_1 = arith.constant 0 : i32
    return %arg0, %c0_i32, %c0_i32_0 : i32, i32, i32
  }
  func.func @transform_2(%arg0: i32) -> (i32, i32, i32) {
    %c0_i32 = arith.constant 0 : i32
    %c0_i32_0 = arith.constant 0 : i32
    %c0_i32_1 = arith.constant 0 : i32
    return %arg0, %c0_i32, %c0_i32_0 : i32, i32, i32
  }
  func.func @transform_3(%arg0: i32) -> (i32, i32) {
    %c0_i32 = arith.constant 0 : i32
    %c0_i32_0 = arith.constant 0 : i32
    %c0_i32_1 = arith.constant 0 : i32
    return %c0_i32, %c0_i32_0 : i32, i32
  }
  func.func @transform_4(%arg0: i32) -> (i32, i32) {
    %c0_i32 = arith.constant 0 : i32
    %c0_i32_0 = arith.constant 0 : i32
    %c0_i32_1 = arith.constant 0 : i32
    return %c0_i32, %c0_i32_0 : i32, i32
  }
  func.func @transform_5(%arg0: i32) -> (i32, i32, i32) {
    %c0_i32 = arith.constant 0 : i32
    %c0_i32_0 = arith.constant 0 : i32
    %c0_i32_1 = arith.constant 0 : i32
    return %arg0, %c0_i32, %c0_i32_0 : i32, i32, i32
  }
}

</mosaic_0001>

<bundles_post_ra>
// kernel: tpu_custom_call.1
= control target key start
LH: loop header
LB: loop body
LE: loop exit
PB: predicated region body
PF: predicated region fallthrough
CT: control target
= control target key end

     0   :  { %10 = vsyncpa [#allocation3], 0  ;;  %s957_s0 = inlined_call_operand.hbm [shape: f32[2,16,32], index: 0, kind: input, shape index: {}]   ;;  %s958_s1 = inlined_call_operand.hbm [shape: f32[2,16,33], index: 1, kind: input, shape index: {}]   ;;  %s959_s2 = inlined_call_operand.hbm [shape: f32[2,16,16], index: 2, kind: input, shape index: {}]   ;;  %s960_s3 = inlined_call_operand.hbm [shape: f32[32,256], index: 3, kind: input, shape index: {}]   ;;  %s961_s4 = inlined_call_operand.hbm [shape: f32[33,128], index: 4, kind: input, shape index: {}]   ;;  %s962_s5 = inlined_call_operand.hbm [shape: f32[2,16,128], index: 5, kind: output, shape index: {}]  }
   0x1   :  { %11 = vsyncpa [#allocation6], 0 }
   0x2   :  { %12 = vsyncpa [#allocation9], 0 }
   0x3   :  { %13 = vsyncpa [#allocation4], 0  ;;  %s879_s18 = smov [#allocation5]   ;;  %s880_s20 = smov [#allocation8]  }
   0x4   :  { %s31_s19 = sshll.u32 %s879_s18, 4  ;;  %s55_s21 = sshll.u32 %s880_s20, 4  ;;  %s32_s19 = int_to_ptr.vmem [resolvable:$true] %s31_s19  ;;  %s56_s21 = int_to_ptr.vmem [resolvable:$true] %s55_s21 }
   0x5   :  { %s759_s22 = scalar_lea.vmem %s32_s19, 512  ;;  %p764_p1 = scmp.lt.s32.totalorder %s32_s19, %s32_s19 }
   0x6   :  { %p760_p0 = scmp.ne.s32.totalorder %s32_s19, %s759_s22  ;;  %p765_p2 = scmp.lt.s32.totalorder %s759_s22, %s759_s22 }
   0x8   :  { %p766_p3 = por %p765_p2, %p764_p1 }
   0xa   :  { %p767_p4 = pnand %p766_p3, %p760_p0 }
   0xc   :  { %770 = shalt.err (!%p767_p4)
}
   0xd   :  { %s881_s23 = smov 128   ;;  %s882_s24 = smov 8  }
   0xe   :  { %37 = dma.hbm_to_vmem [thread:$0]  %s958_s1, 512, %s32_s19, [#allocation6], %s881_s23, %s881_s23, %s882_s24  }
   0xf   :  { %s779_s27 = scalar_lea.vmem %s56_s21, 1024  ;;  %p784_p6 = scmp.lt.s32.totalorder %s56_s21, %s56_s21 }
  0x10   :  { %p780_p5 = scmp.ne.s32.totalorder %s56_s21, %s779_s27  ;;  %p785_p7 = scmp.lt.s32.totalorder %s779_s27, %s779_s27 }
  0x12   :  { %p786_p8 = por %p785_p7, %p784_p6 }
  0x14   :  { %p787_p9 = pnand %p786_p8, %p780_p5 }
  0x16   :  { %790 = shalt.err (!%p787_p9)
}
  0x17   :  { %s883_s28 = smov 256   ;;  %s884_s29 = smov 16  }
  0x18   :  { %61 = dma.hbm_to_vmem [thread:$0]  %s960_s3, 1024, %s56_s21, [#allocation9], %s883_s28, %s883_s28, %s884_s29  }
  0x19   :  { %s885_s7 = smov [#allocation2]   ;;  %s886_s9 = smov [#allocation7]  }
  0x1a   :  { %s19_s8 = sshll.u32 %s885_s7, 4  ;;  %s43_s10 = sshll.u32 %s886_s9, 4  ;;  %s20_s8 = int_to_ptr.vmem [resolvable:$true] %s19_s8  ;;  %s44_s10 = int_to_ptr.vmem [resolvable:$true] %s43_s10 }
  0x1b   :  { %s799_s1 = scalar_lea.vmem %s20_s8, 512  ;;  %p804_p11 = scmp.lt.s32.totalorder %s20_s8, %s20_s8 }
  0x1c   :  { %p800_p10 = scmp.ne.s32.totalorder %s20_s8, %s799_s1  ;;  %p805_p12 = scmp.lt.s32.totalorder %s799_s1, %s799_s1 }
  0x1e   :  { %p806_p13 = por %p805_p12, %p804_p11 }
  0x20   :  { %p807_p0 = pnand %p806_p13, %p800_p10 }
  0x22   :  { %810 = shalt.err (!%p807_p0)
}
  0x23   :  { %25 = dma.hbm_to_vmem [thread:$0]  %s957_s0, 512, %s20_s8, [#allocation3], %s881_s23, %s881_s23, %s882_s24  }
  0x24   :  { %s819_s3 = scalar_lea.vmem %s44_s10, 512  ;;  %p824_p2 = scmp.lt.s32.totalorder %s44_s10, %s44_s10 }
  0x25   :  { %p820_p1 = scmp.ne.s32.totalorder %s44_s10, %s819_s3  ;;  %p825_p3 = scmp.lt.s32.totalorder %s819_s3, %s819_s3 }
  0x27   :  { %p826_p4 = por %p825_p3, %p824_p2 }
  0x29   :  { %p827_p5 = pnand %p826_p4, %p820_p1 }
  0x2b   :  { %830 = shalt.err (!%p827_p5)
}
  0x2c   :  { %49 = dma.hbm_to_vmem [thread:$0]  %s959_s2, 512, %s44_s10, [#allocation6], %s881_s23, %s881_s23, %s882_s24  }
  0x2d   :  { %s887_s15 = smov [#allocation10]  }
  0x2e   :  { %s67_s16 = sshll.u32 %s887_s15, 4  ;;  %s68_s16 = int_to_ptr.vmem [resolvable:$true] %s67_s16 }
  0x2f   :  { %s839_s17 = scalar_lea.vmem %s68_s16, 640  ;;  %p844_p7 = scmp.lt.s32.totalorder %s68_s16, %s68_s16 }
  0x30   :  { %p840_p6 = scmp.ne.s32.totalorder %s68_s16, %s839_s17  ;;  %p845_p8 = scmp.lt.s32.totalorder %s839_s17, %s839_s17 }
  0x32   :  { %p846_p9 = por %p845_p8, %p844_p7 }
  0x34   :  { %p847_p10 = pnand %p846_p9, %p840_p6 }
  0x36   :  { %850 = shalt.err (!%p847_p10)
}
  0x37   :  { %73 = dma.hbm_to_vmem [thread:$0]  %s961_s4, 640, %s68_s16, [#allocation9], %s881_s23, %s881_s23, %s882_s24  }
  0x38   :  { %871 = dma.done.wait [#allocation3], 512  }
  0x39   :  { %872 = vsyncadd [#allocation3], 4294966784 }
  0x3a   :  { %873 = dma.done.wait [#allocation6], 1024  }
  0x3b   :  { %874 = vsyncadd [#allocation6], 4294966272 }
  0x3c   :  { %875 = dma.done.wait [#allocation9], 1664  }
  0x3d   :  { %876 = vsyncadd [#allocation9], 4294965632  ;;  %v888_v0 = vmov 0.0   ;;  %v100_v1 = vld [vmem:[#allocation8 + $0x38] sm:$0xff]  ;;  %v99_v2 = vld [vmem:[#allocation8 + $0x30] sm:$0xff]  ;;  %vm101_vm0 = vcmask 261120  }
  0x3e   :  { %178 = vmatprep.mubr.f32.mxu0 %v888_v0  ;;  %v98_v3 = vld [vmem:[#allocation8 + $0x28] sm:$0xff]  ;;  %138 = vmatprep.subr.mxu0 %v100_v1  ;;  %v97_v4 = vld [vmem:[#allocation8 + $0x20] sm:$0xff]  ;;  %v96_v5 = vld [vmem:[#allocation8 + $0x18] sm:$0xff]  ;;  %vm546_vm1 = vcmask 1040384   ;;  %vm365_vm2 = vcmask 130048   ;;  %vm533_vm3 = vcmask 269312  }
  0x3f   :  { %139 = vmatpush1.msra.mxu0 %v99_v2  ;;  %v95_v6 = vld [vmem:[#allocation8 + $0x10] sm:$0xff]  ;;  %v94_v7 = vld [vmem:[#allocation8 + $0x8] sm:$0xff]  ;;  %v93_v8 = vld [vmem:[#allocation8] sm:$0xff]  ;;  %s889_s2 = smov [#allocation11]  }
  0x40   :  { %140 = vmatprep.subr.mxu0 %v98_v3  ;;  %v89_v9 = vld [vmem:[#allocation2] sm:$0xff]  ;;  %v90_v10 = vld [vmem:[#allocation2 + $0x8] sm:$0xff]  ;;  %v91_v11 = vld [vmem:[#allocation2 + $0x10] sm:$0xff]  ;;  %s644_s4 = sshll.u32 %s889_s2, 4  ;;  %s645_s4 = int_to_ptr.vmem [resolvable:$true] %s644_s4 }
  0x41   :  { %141 = vmatpush1.msra.mxu0 %v97_v4  ;;  %v92_v12 = vld [vmem:[#allocation2 + $0x18] sm:$0xff]  ;;  %v362_v21 = vld [vmem:[#allocation5 + $0x8] sm:$0xff]  ;;  %v361_v22 = vld [vmem:[#allocation5] sm:$0xff]  ;;  %s851_s19 = scalar_lea.vmem %s645_s4, 512  ;;  %p856_p12 = scmp.lt.s32.totalorder %s645_s4, %s645_s4 }
  0x42   :  { %142 = vmatprep.subr.mxu0 %v96_v5  ;;  %v364_v23 = vld [vmem:[#allocation5 + $0x18] sm:$0xff]  ;;  %v363_v24 = vld [vmem:[#allocation5 + $0x10] sm:$0xff]  ;;  %v532_v25 = vld [vmem:[#allocation10 + $0x20] sm:$0x1]  ;;  %p852_p11 = scmp.ne.s32.totalorder %s645_s4, %s851_s19  ;;  %p857_p13 = scmp.lt.s32.totalorder %s851_s19, %s851_s19 }
  0x43   :  { %143 = vmatpush1.msra.mxu0 %v95_v6  ;;  %v353_v27 = vld [vmem:[#allocation7] sm:$0xff]  ;;  %v354_v28 = vld [vmem:[#allocation7 + $0x8] sm:$0xff]  ;;  %v531_v32 = vld [vmem:[#allocation10 + $0x18] sm:$0xff] }
  0x44   :  { %144 = vmatprep.subr.mxu0 %v94_v7  ;;  %v530_v33 = vld [vmem:[#allocation10 + $0x10] sm:$0xff]  ;;  %v356_v36 = vld [vmem:[#allocation7 + $0x18] sm:$0xff]  ;;  %v529_v40 = vld [vmem:[#allocation10 + $0x8] sm:$0xff]  ;;  %p858_p0 = por %p857_p13, %p856_p12 }
  0x45   :  { %145 = vmatpush1.msra.mxu0 %v93_v8  ;;  %v355_v35 = vld [vmem:[#allocation7 + $0x10] sm:$0xff]  ;;  %v528_v41 = vld [vmem:[#allocation10] sm:$0xff] }
  0x46   :  { %658 = vmatmul.mubr.msk.f32.vlgmr.msra.gmra.mxu0 %vm101_vm0, %v89_v9  ;;  %p859_p1 = pnand %p858_p0, %p852_p11 }
  0x47   :  { %184 = vmatprep.mubr.f32.mxu0 %v888_v0 }
  0x4a   :  { %659 = vmatmul.mubr.msk.f32.gmra.mxu0 %vm101_vm0, %v90_v10 }
  0x4b   :  { %190 = vmatprep.mubr.f32.mxu0 %v888_v0 }
  0x4e   :  { %660 = vmatmul.mubr.msk.f32.gmra.mxu0 %vm101_vm0, %v91_v11 }
  0x4f   :  { %196 = vmatprep.mubr.f32.mxu0 %v888_v0 }
  0x52   :  { %661 = vmatmul.mubr.msk.f32.gmra.mxu0 %vm101_vm0, %v92_v12 }
 0x106   :  { %v180_v13 = vpop.f32.mrf.mxu0 }
 0x107   :  { %700 = vmatprep.mubr.f32.mxu0 %v180_v13 }
 0x108   :  { %v182_v14 = vpop.f32.mrf.mxu0 }
 0x10a   :  { %v186_v15 = vpop.f32.mrf.mxu0 }
 0x10c   :  { %v188_v16 = vpop.f32.mrf.mxu0 }
 0x10d   :  { %696 = vmatprep.subr.mxu0 %v188_v16 }
 0x10e   :  { %v192_v17 = vpop.f32.mrf.mxu0  ;;  %697 = vmatpush3.xpose.msra.mxu0 %v188_v16 }
 0x10f   :  { %698 = vmatprep.subr.mxu0 %v182_v14  ;;  %707 = vmatprep.mubr.f32.mxu1 %v192_v17 }
 0x110   :  { %v194_v18 = vpop.f32.mrf.mxu0 }
 0x112   :  { %v198_v19 = vpop.f32.mrf.mxu0  ;;  %699 = vmatpush3.xpose.msra.mxu0 %v182_v14 }
 0x113   :  { %717 = vmatprep.subr.mxu0 %v364_v23 }
 0x114   :  { %v200_v20 = vpop.f32.mrf.mxu0 }
 0x115   :  { %701 = vmatmul.mubr.f32.vlgmr.msra.gmra.mxu0 %v186_v15  ;;  %703 = vmatprep.subr.mxu1 %v200_v20 }
 0x116   :  { %704 = vmatpush3.xpose.msra.mxu1 %v200_v20  ;;  %718 = vmatpush3.msra.mxu0 %v364_v23 }
 0x117   :  { %705 = vmatprep.subr.mxu1 %v194_v18  ;;  %719 = vmatprep.subr.mxu0 %v363_v24 }
 0x118   :  { %720 = vmatpush3.msra.mxu0 %v363_v24 }
 0x11a   :  { %706 = vmatpush3.xpose.msra.mxu1 %v194_v18 }
 0x11b   :  { %710 = vmatprep.subr.mxu1 %v362_v21 }
 0x11d   :  { %708 = vmatmul.mubr.f32.vlgmr.msra.gmra.mxu1 %v198_v19 }
 0x11e   :  { %711 = vmatpush3.msra.mxu1 %v362_v21 }
 0x11f   :  { %712 = vmatprep.subr.mxu1 %v361_v22 }
 0x120   :  { %713 = vmatpush3.msra.mxu1 %v361_v22 }
 0x121   :  { %724 = vmatprep.subr.msk.mxu1 %vm546_vm1, %v532_v25 }
 0x1d5   :  { %v702_v26 = vpop.f32.mrf.mxu0 }
 0x1d6   :  { %v358_v31 = vmul.f32 %v702_v26, %v354_v28 }
 0x1d7   :  { %v269_v29 = vpop.f32.mrf.mxu0 }
 0x1d8   :  { %v357_v30 = vmul.f32 %v353_v27, %v269_v29 }
 0x1da   :  { %714 = vmatprep.mubr.msk.f32.mxu1 %vm365_vm2, %v357_v30 }
 0x1db   :  { %715 = vmatmul.mubr.msk.f32.vlgmr.msra.gmra.mxu1 %vm365_vm2, %v358_v31 }
 0x1dc   :  { %725 = vmatpush3.msk.msra.mxu1 %vm546_vm1, %v532_v25 }
 0x1dd   :  { %v709_v34 = vpop.f32.mrf.mxu1  ;;  %726 = vmatprep.subr.mxu1 %v531_v32 }
 0x1de   :  { %727 = vmatpush3.msra.mxu1 %v531_v32  ;;  %v360_v39 = vmul.f32 %v709_v34, %v356_v36 }
 0x1df   :  { %v344_v37 = vpop.f32.mrf.mxu1  ;;  %728 = vmatprep.subr.mxu1 %v530_v33 }
 0x1e0   :  { %v359_v38 = vmul.f32 %v355_v35, %v344_v37  ;;  %729 = vmatpush3.msra.mxu1 %v530_v33 }
 0x1e1   :  { %730 = vmatprep.subr.mxu1 %v529_v40 }
 0x1e2   :  { %721 = vmatprep.mubr.msk.f32.mxu0 %vm365_vm2, %v359_v38  ;;  %731 = vmatpush3.msra.mxu1 %v529_v40 }
 0x1e3   :  { %722 = vmatmul.mubr.msk.f32.vlgmr.msra.gmra.mxu0 %vm365_vm2, %v360_v39  ;;  %732 = vmatprep.subr.mxu1 %v528_v41 }
 0x1e4   :  { %733 = vmatpush3.msra.mxu1 %v528_v41 }
 0x29b   :  { %v716_v42 = vpop.f32.mrf.mxu1 }
 0x29d   :  { %v438_v43 = vpop.f32.mrf.mxu1 }
 0x29e   :  { %734 = vmatprep.mubr.msk.f32.mxu1 %vm533_vm3, %v438_v43 }
 0x29f   :  { %735 = vmatmul.mubr.msk.f32.vlgmr.msra.gmra.mxu1 %vm533_vm3, %v716_v42 }
 0x2a3   :  { %v723_v44 = vpop.f32.mrf.mxu0 }
 0x2a5   :  { %v519_v45 = vpop.f32.mrf.mxu0 }
 0x2a6   :  { %737 = vmatprep.mubr.msk.f32.mxu1 %vm533_vm3, %v519_v45 }
 0x2a7   :  { %738 = vmatmul.mubr.msk.f32.gmra.mxu1 %vm533_vm3, %v723_v44 }
 0x35f   :  { %v736_v46 = vpop.f32.mrf.mxu1 }
 0x360   :  { %636 = vst [vmem:[#allocation11 + $0x8] sm:$0xff] %v736_v46 }
 0x361   :  { %v616_v47 = vpop.f32.mrf.mxu1 }
 0x362   :  { %635 = vst [vmem:[#allocation11] sm:$0xff] %v616_v47 }
 0x367   :  { %v739_v48 = vpop.f32.mrf.mxu1 }
 0x368   :  { %638 = vst [vmem:[#allocation11 + $0x18] sm:$0xff] %v739_v48 }
 0x369   :  { %v626_v49 = vpop.f32.mrf.mxu1 }
 0x36a   :  { %637 = vst [vmem:[#allocation11 + $0x10] sm:$0xff] %v626_v49 }
 0x36b   :  { %862 = shalt.err (!%p859_p1)
}
 0x36c   :  { %650 = dma.vmem_to_hbm [thread:$0]  %s645_s4, 512, %s962_s5, [#allocation4], %s881_s23, %s881_s23, %s882_s24  }
 0x36d   :  { %877 = dma.done.wait [#allocation4], 512  }
 0x36e   :  { %878 = vsyncadd [#allocation4], 4294966784 }
 0x36f   :  { %654 = vsyncpa [#allocation3], 1 }
 0x370   :  { %655 = vsyncpa [#allocation6], 1 }
 0x371   :  { %656 = vsyncpa [#allocation9], 1 }
 0x372   :  { %657 = vsyncpa [#allocation4], 1 }

</bundles_post_ra>
